<compile_context>
chip_gen: v6e
topology: v6e:2x2x1
jax: 0.10.0
libtpu: 0.0.40
codegen_flags: <defaults>
</compile_context>

<pallas_src>
import functools

import jax
import jax.numpy as jnp
from jax.experimental import pallas as pl
from jax.experimental.pallas import tpu as pltpu


def _pre_shift_tokens_kernel(x_ref, w_ref, b_ref, o_ref, shifted_ref, *, shifts):
    # x_ref:       (1, N, D)  input block for one batch element (resident over j)
    # w_ref:       (D, TC)    column tile of the dense weight
    # b_ref:       (1, TC)    column tile of the bias
    # o_ref:       (1, N, TC) output tile
    # shifted_ref: (N, D)     VMEM scratch holding the token-shifted input
    N, D = x_ref.shape[1], x_ref.shape[2]
    segments = len(shifts)
    f = D // segments
    j = pl.program_id(1)

    @pl.when(j == 0)
    def _build_shifted():
        # Build the shifted tensor once per batch element with static slices
        # (all shift amounts are Python constants), then do one full aligned
        # store into the scratch.
        x = x_ref[0]  # (N, D), input dtype
        parts = []
        for s, a in enumerate(shifts):
            c0, c1 = s * f, (s + 1) * f
            seg = x[:, c0:c1]  # (N, f)
            if a == 0:
                out_seg = seg
            elif abs(a) >= N:
                out_seg = jnp.zeros((N, f), x.dtype)
            elif a > 0:
                # out[i] = t[i - a] for i >= a else 0
                out_seg = jnp.concatenate(
                    [jnp.zeros((a, f), x.dtype), seg[0:N - a, :]], axis=0)
            else:
                m = -a
                # out[i] = t[i + m] for i < N - m else 0
                out_seg = jnp.concatenate(
                    [seg[m:N, :], jnp.zeros((m, f), x.dtype)], axis=0)
            parts.append(out_seg)
        if segments * f < D:
            parts.append(x[:, segments * f:D])  # "rest" features, unshifted
        shifted = parts[0] if len(parts) == 1 else jnp.concatenate(parts, axis=-1)
        shifted_ref[...] = shifted

    # fn: dense layer on the MXU.  Operands in input dtype, f32 accumulator.
    y = jnp.dot(shifted_ref[...], w_ref[...], preferred_element_type=jnp.float32)
    y = y + b_ref[...].astype(jnp.float32)
    o_ref[0] = y.astype(o_ref.dtype)


def _pick_col_tile(D):
    # 256-aligned tiles keep the v6e/v7x 2x256x256 MXU full; 128 suits v5e's
    # 4x128x128 MXU; fall back to full D for tiny feature dims.
    for t in (512, 256, 128):
        if D % t == 0:
            return t
    return D


def pre_shift_tokens(x, w, b, shifts):
    B, N, D = x.shape
    assert w.shape == (D, D) and b.shape[-1] == D
    shifts = tuple(shifts)
    tc = _pick_col_tile(D)
    n_col = D // tc

    kernel = functools.partial(_pre_shift_tokens_kernel, shifts=shifts)

    # Conservative VMEM estimate (double-buffered blocks + scratch); raise the
    # scoped limit only when the 32 MiB default would not be enough.
    bx = jnp.dtype(x.dtype).itemsize
    bw = jnp.dtype(w.dtype).itemsize
    bb = jnp.dtype(b.dtype).itemsize
    est = (2 * N * D * bx          # x block (double-buffered)
           + 2 * D * tc * bw       # W column tile
           + 2 * tc * bb           # bias tile
           + 2 * N * tc * bx       # output tile
           + N * D * bx            # shifted scratch
           + (2 << 20))            # headroom
    compiler_kwargs = dict(dimension_semantics=("parallel", "arbitrary"))
    if est > (32 << 20):
        compiler_kwargs["vmem_limit_bytes"] = int(est)

    # TODO(synk): for very large N, the (N, D) shifted scratch could exceed
    # VMEM; token tiling with a max(|shift|) halo would be needed there.
    return pl.pallas_call(
        kernel,
        out_shape=jax.ShapeDtypeStruct((B, N, D), x.dtype),
        grid=(B, n_col),
        in_specs=[
            pl.BlockSpec((1, N, D), lambda i, j: (i, 0, 0)),   # x, resident over j
            pl.BlockSpec((D, tc), lambda i, j: (0, j)),        # W column tile
            pl.BlockSpec((1, tc), lambda i, j: (0, j)),        # bias column tile
        ],
        out_specs=pl.BlockSpec((1, N, tc), lambda i, j: (i, 0, j)),
        scratch_shapes=[pltpu.VMEM((N, D), x.dtype)],
        compiler_params=pltpu.CompilerParams(**compiler_kwargs),
    )(x, w, b)


def _reference(x, w, b, shifts):
    """Pure-JAX mirror of the PyTorch forward for verification."""
    shifts = tuple(shifts)
    if shifts == (0,):
        return x @ w + b
    segments = len(shifts)
    N = x.shape[1]
    f = x.shape[-1] // segments
    segs = []
    for s, a in enumerate(shifts):
        t = x[..., s * f:(s + 1) * f]
        if a != 0:
            t = jnp.pad(t, ((0, 0), (max(a, 0), max(-a, 0)), (0, 0)))
            t = t[:, :N, :] if a > 0 else t[:, -a:, :]
        segs.append(t)
    rest = x[..., segments * f:]
    xs = jnp.concatenate(segs + [rest], axis=-1)
    return xs @ w + b


if __name__ == "__main__":
    B, N, D = 2, 8, 32
    shifts = (0, 1, -1)  # D // 3 = 10 feats per shift, 2 "rest" feats untouched

    key = jax.random.PRNGKey(0)
    kx, kw, kb = jax.random.split(key, 3)
    x = jax.random.normal(kx, (B, N, D), dtype=jnp.float32)
    w = jax.random.normal(kw, (D, D), dtype=jnp.float32) * 0.02
    b = jax.random.normal(kb, (1, D), dtype=jnp.float32) * 0.01

    out = pre_shift_tokens(x, w, b, shifts)
    out = jax.block_until_ready(out)

    ref = _reference(x, w, b, shifts)
    assert out.shape == (B, N, D)
    assert jnp.allclose(out, ref, atol=1e-5, rtol=1e-5), "mismatch vs reference"
    print("KERNEL_OK")
</pallas_src>

<mosaic_0001>
module attributes {stable_mosaic.version = 11 : i64} {
  func.func @_pre_shift_tokens_kernel(%arg0: i32, %arg1: i32, %arg2: memref<1x8x32xf32, #tpu.memory_space<vmem>>, %arg3: memref<32x32xf32, #tpu.memory_space<vmem>>, %arg4: memref<1x32xf32, #tpu.memory_space<vmem>>, %arg5: memref<1x8x32xf32, #tpu.memory_space<vmem>>, %arg6: memref<8x32xf32, #tpu.memory_space<vmem>>) attributes {dimension_semantics = [#tpu.dimension_semantics<parallel>, #tpu.dimension_semantics<arbitrary>], iteration_bounds = array<i64: 2, 1>, scalar_prefetch = 0 : i64, scratch_operands = 1 : i64, tpu.core_type = #tpu.core_type<tc>, window_params = [{transform_indices = @transform_0, window_bounds = array<i64: 1, 8, 32>}, {transform_indices = @transform_1, window_bounds = array<i64: 32, 32>}, {transform_indices = @transform_2, window_bounds = array<i64: 1, 32>}, {transform_indices = @transform_3, window_bounds = array<i64: 1, 8, 32>}]} {
    %c0_i32 = arith.constant 0 : i32
    %0 = arith.cmpi eq, %arg1, %c0_i32 : i32
    %1 = arith.extui %0 : i1 to i32
    %c0_i32_0 = arith.constant 0 : i32
    %2 = arith.cmpi ne, %1, %c0_i32_0 : i32
    scf.if %2 {
      %c0_9 = arith.constant 0 : index
      %c0_10 = arith.constant 0 : index
      %c0_11 = arith.constant 0 : index
      %12 = vector.load %arg2[%c0_9, %c0_10, %c0_11] : memref<1x8x32xf32, #tpu.memory_space<vmem>>, vector<1x8x32xf32>
      %13 = vector.shape_cast %12 : vector<1x8x32xf32> to vector<8x32xf32>
      %14 = vector.extract_strided_slice %13 {offsets = [0, 0], sizes = [8, 10], strides = [1, 1]} : vector<8x32xf32> to vector<8x10xf32>
      %15 = vector.extract_strided_slice %13 {offsets = [0, 10], sizes = [8, 10], strides = [1, 1]} : vector<8x32xf32> to vector<8x10xf32>
      %cst_12 = arith.constant 0.000000e+00 : f32
      %16 = vector.broadcast %cst_12 : f32 to vector<1x10xf32>
      %17 = vector.extract_strided_slice %15 {offsets = [0, 0], sizes = [7, 10], strides = [1, 1]} : vector<8x10xf32> to vector<7x10xf32>
      %18 = tpu.concatenate %16, %17 in 0 : vector<1x10xf32>, vector<7x10xf32> -> vector<8x10xf32>
      %19 = vector.extract_strided_slice %13 {offsets = [0, 20], sizes = [8, 10], strides = [1, 1]} : vector<8x32xf32> to vector<8x10xf32>
      %20 = vector.extract_strided_slice %19 {offsets = [1, 0], sizes = [7, 10], strides = [1, 1]} : vector<8x10xf32> to vector<7x10xf32>
      %cst_13 = arith.constant 0.000000e+00 : f32
      %21 = vector.broadcast %cst_13 : f32 to vector<1x10xf32>
      %22 = tpu.concatenate %20, %21 in 0 : vector<7x10xf32>, vector<1x10xf32> -> vector<8x10xf32>
      %23 = vector.extract_strided_slice %13 {offsets = [0, 30], sizes = [8, 2], strides = [1, 1]} : vector<8x32xf32> to vector<8x2xf32>
      %24 = tpu.concatenate %14, %18, %22, %23 in 1 : vector<8x10xf32>, vector<8x10xf32>, vector<8x10xf32>, vector<8x2xf32> -> vector<8x32xf32>
      %c0_14 = arith.constant 0 : index
      %c0_15 = arith.constant 0 : index
      %25 = vector.load %arg6[%c0_14, %c0_15] : memref<8x32xf32, #tpu.memory_space<vmem>>, vector<8x32xf32>
      tpu.vector_store %arg6[%c0_14, %c0_15], %24 {strides = array<i32>} : memref<8x32xf32, #tpu.memory_space<vmem>>, vector<8x32xf32>,
    } else {
    }
    %c0 = arith.constant 0 : index
    %c0_1 = arith.constant 0 : index
    %3 = vector.load %arg6[%c0, %c0_1] : memref<8x32xf32, #tpu.memory_space<vmem>>, vector<8x32xf32>
    %c0_2 = arith.constant 0 : index
    %c0_3 = arith.constant 0 : index
    %4 = vector.load %arg3[%c0_2, %c0_3] : memref<32x32xf32, #tpu.memory_space<vmem>>, vector<32x32xf32>
    %cst = arith.constant dense<0.000000e+00> : vector<8x32xf32>
    %5 = tpu.matmul %3, %4, %cst {dimension_numbers = #tpu.dot_dimension_numbers<[1], [0], [0], [1], [0, 0, 1, 1], [], []>} : vector<8x32xf32>, vector<32x32xf32>, vector<8x32xf32> -> vector<8x32xf32>
    %c0_4 = arith.constant 0 : index
    %c0_5 = arith.constant 0 : index
    %6 = vector.load %arg4[%c0_4, %c0_5] : memref<1x32xf32, #tpu.memory_space<vmem>>, vector<1x32xf32>
    %7 = vector.broadcast %6 : vector<1x32xf32> to vector<8x32xf32>
    %8 = arith.addf %5, %7 : vector<8x32xf32>
    %c0_6 = arith.constant 0 : index
    %c0_7 = arith.constant 0 : index
    %c0_8 = arith.constant 0 : index
    %9 = vector.load %arg5[%c0_6, %c0_7, %c0_8] : memref<1x8x32xf32, #tpu.memory_space<vmem>>, vector<1x8x32xf32>
    %10 = vector.shape_cast %9 : vector<1x8x32xf32> to vector<8x32xf32>
    %11 = vector.shape_cast %8 : vector<8x32xf32> to vector<1x8x32xf32>
    tpu.vector_store %arg5[%c0_6, %c0_7, %c0_8], %11 {strides = array<i32>} : memref<1x8x32xf32, #tpu.memory_space<vmem>>, vector<1x8x32xf32>,
    return
  }
  func.func @transform_0(%arg0: i32, %arg1: i32) -> (i32, i32, i32) {
    %c0_i32 = arith.constant 0 : i32
    %c0_i32_0 = arith.constant 0 : i32
    %c0_i32_1 = arith.constant 0 : i32
    return %arg0, %c0_i32, %c0_i32_0 : i32, i32, i32
  }
  func.func @transform_1(%arg0: i32, %arg1: i32) -> (i32, i32) {
    %c0_i32 = arith.constant 0 : i32
    %c0_i32_0 = arith.constant 0 : i32
    return %c0_i32, %arg1 : i32, i32
  }
  func.func @transform_2(%arg0: i32, %arg1: i32) -> (i32, i32) {
    %c0_i32 = arith.constant 0 : i32
    %c0_i32_0 = arith.constant 0 : i32
    return %c0_i32, %arg1 : i32, i32
  }
  func.func @transform_3(%arg0: i32, %arg1: i32) -> (i32, i32, i32) {
    %c0_i32 = arith.constant 0 : i32
    %c0_i32_0 = arith.constant 0 : i32
    return %arg0, %c0_i32, %arg1 : i32, i32, i32
  }
}

</mosaic_0001>

<bundles_post_ra>
// kernel: tpu_custom_call.1
= control target key start
LH: loop header
LB: loop body
LE: loop exit
PB: predicated region body
PF: predicated region fallthrough
CT: control target
= control target key end

     0   :  { %8 = vsyncpa [#allocation4], 0  ;;  %s931_s0 = inlined_call_operand.hbm [shape: f32[2,8,32], index: 0, kind: input, shape index: {}]   ;;  %s932_s1 = inlined_call_operand.hbm [shape: f32[32,32], index: 1, kind: input, shape index: {}]   ;;  %s933_s2 = inlined_call_operand.vmem [shape: f32[1,32], index: 2, kind: input, shape index: {}]   ;;  %s934_s3 = inlined_call_operand.hbm [shape: f32[2,8,32], index: 3, kind: output, shape index: {}]  }
   0x1   :  { %10 = vsyncpa [#allocation4 + $0x1], 0 }
   0x2   :  { %11 = vsyncpa [#allocation7], 0 }
   0x3   :  { %12 = vsyncpa [#allocation5], 0 }
   0x4   :  { %14 = vsyncpa [#allocation5 + $0x1], 0  ;;  %s751_s12 = smov 0   ;;  %s753_s13 = smov 0  }
   0x5   :  { %s755_s14 = smov 0   ;;  %s757_s15 = smov 0  }
   0x6   :  { %s759_s16 = smov 0   ;;  %s761_s17 = smov 0  }
   0x7 LB: > { %s469_s18 = sadd.s32 4294967295, %s720_s17   ;;  %s470_s19 = sadd.s32 4294967294, %s720_s17   ;;  %s720_s17 = sphi %s761_s17, %s20_s17   ;;  %s716_s16 = sphi %s759_s16, %s952_s16   ;;  %s712_s15 = sphi %s757_s15, %s951_s15   ;;  %s708_s14 = sphi %s755_s14, %s950_s14   ;;  %s704_s13 = sphi %s753_s13, %s949_s13   ;;  %s700_s12 = sphi %s751_s12, %s948_s12  }
   0x8   : > { %p52_p0 = scmp.ne.s32.totalorder %s704_s13, %s700_s12  ;;  %p785_p1 = scmp.eq.s32.totalorder %s469_s18, 0 }
   0x9   : > { %p789_p2 = scmp.eq.s32.totalorder %s469_s18, 1  ;;  %p136_p3 = scmp.eq.s32.totalorder %s470_s19, 1 }
   0xa   : > { %p795_p4 = por %p785_p1, %p52_p0  ;;  %p471_p5 = scmp.ge.s32.totalorder %s720_s17, 1 }
   0xb   : > { %p800_p6 = por %p136_p3, %p52_p0  ;;  %p143_p7 = scmp.lt.s32.totalorder %s720_s17, 3 }
   0xc   : > { %s938_s22 = scalar_select %p795_p4, 1, 0 }
   0xd   : > { %s939_s23 = scalar_select %p800_p6, 1, 0 }
   0xe   : > { %p805_p8 = pnand %p471_p5, %p143_p7  ;;  %s722_s25 = smov [#allocation6]  }
   0xf   : > { %s157_s26 = sshll.u32 %s722_s25, 4  ;;  %s32_s28 = sadd.s32 1, %s716_s16  ;;  %s158_s26 = int_to_ptr.vmem [resolvable:$true] %s157_s26 }
  0x10   : > { %p511_p9 = pneg %p805_p8  ;;  %s593_s29 = scalar_lea.vmem %s158_s26, 512 }
  0x11   : > { %p594_p13 = scmp.ne.s32.totalorder %s158_s26, %s593_s29  ;;  %p601_p5 = scmp.lt.s32.totalorder %s158_s26, %s158_s26 }
  0x12   : > { %p814_p11 = pnand %p511_p9, %p785_p1  ;;  %p602_p7 = scmp.lt.s32.totalorder %s593_s29, %s593_s29 }
  0x14   : > { %p584_p12 = pneg %p814_p11  ;;  %p603_p6 = por %p602_p7, %p601_p5 }
  0x16   : > { %p596_p0 = pnand %p594_p13, %p584_p12 }
  0x18   : > { %p597_p3 = pneg %p596_p0 }
  0x1a   : > { %p604_p4 = pnand %p603_p6, %p597_p3 }
  0x1c   : > { %607 = shalt.err (!%p604_p4)
}
  0x1d   : > { %s723_s30 = smov 128   ;;  %s724_s4 = smov 8  }
  0x1e   : > { %514 = dma.hbm_to_vmem [thread:$0]  (!%p814_p11), %s932_s1, 512, %s158_s26, [#allocation7], %s723_s30, %s723_s30, %s724_s4  }
  0x1f   : > { %p34_p6 = scmp.ge.s32.totalorder %s32_s28, 2  ;;  %s39_s7 = sadd.s32 1, %s708_s14 }
  0x20   : > { %p46_p4 = scmp.ne.s32.totalorder %s708_s14, %s704_s13  ;;  %p47_p9 = scmp.eq.s32.totalorder %s720_s17, 0 }
  0x21   : > { %s954_s28 = smov (%p34_p6, %s32_s28), 0  ;;  %p524_p0 = scmp.lt.s32.totalorder %s720_s17, 2 }
  0x22   : > { %p832_p12 = por %p47_p9, %p46_p4  ;;  %p838_p13 = por %p789_p2, %p46_p4 }
  0x23   : > { %s36_s10 = ssub.s32 %s716_s16, %s954_s28  ;;  %s177_s11 = sand.u32 1, %s708_s14  }
  0x24   : > { %p37_p11 = scmp.eq.s32.totalorder %s36_s10, 0  ;;  %s475_s18 = sshll.u32 %s177_s11, 3 }
  0x25   : > { %s476_s25 = sshll.u32 %s716_s16, 7  ;;  %s181_s30 = scalar_lea.vmem [#allocation3], %s475_s18 }
  0x26   : > { %s847_s19 = scalar_select %p37_p11, %s708_s14, %s39_s7  }
  0x27   : > { %s186_s29 = scalar_lea.hbm %s931_s0, %s476_s25  ;;  %s188_s4 = sshll.u32 %s181_s30, 4  ;;  %s189_s4 = int_to_ptr.vmem [resolvable:$true] %s188_s4 }
  0x28   : > { %p855_p2 = pnand %p524_p0, %p832_p12  ;;  %s178_s5 = scalar_lea.sflag [#allocation4], %s177_s11 }
  0x29   : > { %s621_s6 = scalar_lea.vmem %s189_s4, 128  ;;  %s725_s7 = smov [#allocation3]  }
  0x2a   : > { %p610_p3 = pneg %p855_p2  ;;  %p622_p5 = scmp.ne.s32.totalorder %s189_s4, %s621_s6 }
  0x2b   : > { %s626_s10 = sshll.u32 %s725_s7, 4  ;;  %s627_s10 = int_to_ptr.vmem [resolvable:$false] %s626_s10 }
  0x2c   : > { %p624_p7 = pnand %p622_p5, %p610_p3  ;;  %s628_s25 = scalar_lea.vmem %s627_s10, 256 }
  0x2d   : > { %p629_p4 = scmp.lt.s32.totalorder %s189_s4, %s627_s10  ;;  %p630_p9 = scmp.lt.s32.totalorder %s628_s25, %s621_s6 }
  0x2e   : > { %p625_p6 = pneg %p624_p7 }
  0x2f   : > { %p631_p11 = por %p630_p9, %p629_p4 }
  0x31   : > { %p632_p10 = pnand %p631_p11, %p625_p6 }
  0x33   : > { %635 = shalt.err (!%p632_p10)
}
  0x34   : > { %518 = dma.hbm_to_vmem [thread:$0]  (!%p855_p2), %s186_s29, 128, %s189_s4, %s178_s5  }
  0x35   : > { %197 = sbr.rel (%p805_p8) target bundleno = 514 (0x202), region = 32  ;;  %s866_s8 = sand.u32 (!%p805_p8), 1, %s704_s13  }
  0x36   : > { %s478_s11 = sshll.u32 (!%p805_p8), %s866_s8, 3  ;;  %s200_s18 = scalar_lea.sflag (!%p805_p8), [#allocation4], %s866_s8 }
  0x37   : > { %s203_s26 = scalar_lea.vmem (!%p805_p8), [#allocation3], %s478_s11  ;;  %p945_p12 = scmp.ne.s32.totalorder (!%p805_p8), %s938_s22, 0 }
  0x3a   : > { %687 = dma.done.wait (%p945_p12), %s200_s18, 128  }
  0x3b   : > { %689 = vsyncadd (%p945_p12), %s200_s18, 4294967168 }
  0x3c   : > { %691 = dma.done.wait (%p785_p1), [#allocation7], 512  }
  0x3d   : > { %693 = vsyncadd (%p785_p1), [#allocation7], 4294966784  ;;  %v240_v0 = vld [vmem:[%s203_s26] sm:$0xff]  ;;  %s726_s24 = smov 118   ;;  %v727_v3 = vmov 0.0   ;;  %vm728_vm0 = vmmov 0  }
  0x3e   : > { %v242_v1 = vrot.slane %v240_v0, 7  ;;  %v268_v2 = vld [vmem:[#allocation6 + $0x18] sm:$0xff]  ;;  %492 = vmatprep.subr.mxu0 %v727_v3  ;;  %v267_v4 = vld [vmem:[#allocation6 + $0x10] sm:$0xff]  ;;  %500 = vmatprep.mubr.msk.f32.mxu0 %vm728_vm0, %v727_v3  ;;  %v266_v5 = vld [vmem:[#allocation6 + $0x8] sm:$0xff]  ;;  %vm246_vm1 = vcmask 1040384   ;;  %s729_s20 = smov 10  }
  0x3f   : > { %493 = vmatpush3.msra.mxu0 %v268_v2  ;;  %v265_v6 = vld [vmem:[#allocation6] sm:$0xff]  ;;  %v248_v9 = vrot.slane %v240_v0, 1  ;;  %vm250_vm2 = vcmask 1046528   ;;  %vm256_vm3 = vcmask 80896   ;;  %vm258_vm4 = vcmask 162816   ;;  %s484_s29 = sshll.u32 %s712_s15, 7 }
  0x40   : > { %243 = vrot.lane.b32.xlu0 %v242_v1, %s726_s24  ;;  %494 = vmatprep.subr.mxu0 %v727_v3  ;;  %vm260_vm5 = vcmask 244736   ;;  %vm262_vm6 = vcmask 261120   ;;  %v481_v16 = vld [vmem:[%s933_s2] ss:$0 sm:$0xff]  ;;  %s232_s30 = scalar_lea.vmem [#allocation8], %s478_s11  ;;  %s889_s6 = scalar_lea.hbm %s934_s3, %s484_s29 }
  0x41   : > { %495 = vmatpush3.msra.mxu0 %v267_v4  ;;  %v251_v10 = vsel %vm250_vm2, %v248_v9, 0.0  ;;  %s366_s4 = sshll.u32 %s232_s30, 4  ;;  %s352_s7 = scalar_lea.sflag [#allocation5], %s866_s8  ;;  %s367_s4 = int_to_ptr.vmem [resolvable:$true] %s366_s4 }
  0x42   : > { %496 = vmatprep.subr.mxu0 %v727_v3  ;;  %s636_s10 = scalar_lea.vmem %s367_s4, 128  ;;  %s730_s15 = smov [#allocation8]  }
  0x43   : > { %497 = vmatpush3.msra.mxu0 %v266_v5  ;;  %p637_p1 = scmp.ne.s32.totalorder %s367_s4, %s636_s10  ;;  %s640_s25 = sshll.u32 %s730_s15, 4  ;;  %s641_s25 = int_to_ptr.vmem [resolvable:$false] %s640_s25 }
  0x44   : > { %498 = vmatprep.subr.mxu0 %v727_v3  ;;  %s642_s11 = scalar_lea.vmem %s641_s25, 256  ;;  %p643_p0 = scmp.lt.s32.totalorder %s367_s4, %s641_s25 }
  0x45   : > { %499 = vmatpush3.msra.mxu0 %v265_v6  ;;  %p638_p8 = pnand %p637_p1, %p838_p13  ;;  %p644_p2 = scmp.lt.s32.totalorder %s642_s11, %s636_s10 }
  0x47   : > { %p639_p10 = pneg %p638_p8  ;;  %p645_p3 = por %p644_p2, %p643_p0 }
  0x49   : > { %p646_p5 = pnand %p645_p3, %p639_p10 }
  0xb2   : > { %v244_v7 = vpop.permute.xlu0 %243 }
  0xb3   : > { %v247_v8 = vsel %vm246_vm1, 0.0, %v244_v7 }
  0xb4   : > { %253 = vrot.lane.b32.xlu0 %v247_v8, %s729_s20 }
 0x126   : > { %v254_v11 = vpop.permute.xlu0 %253 }
 0x127   : > { %v257_v12 = vsel %vm256_vm3, %v240_v0, %v254_v11 }
 0x128   : > { %v259_v13 = vsel %vm258_vm4, %v257_v12, %v251_v10 }
 0x129   : > { %v261_v14 = vsel %vm260_vm5, %v259_v13, %v240_v0 }
 0x12a   : > { %263 = vst.msk [vmem:[#allocation2] sm:$0xff] %vm262_vm6, %v261_v14 }
 0x131   : > { %v264_v15 = vld [vmem:[#allocation2] sm:$0xff] }
 0x132   : > { %501 = vmatmul.mubr.msk.f32.vlgmr.msra.gmra.mxu0 %vm262_vm6, %v264_v15 }
 0x1f2   : > { %v346_v17 = vpop.f32.mrf.mxu0 }
 0x1f3   : > { %v347_v18 = vadd.f32 %v481_v16, %v346_v17 }
 0x1f4   : > { %v502_v19 = vpop.f32.mrf.mxu0 }
 0x1f5   : > { %350 = vst.msk [vmem:[%s232_s30] sm:$0xff] %vm262_vm6, %v347_v18 }
 0x1f6   : > { %649 = shalt.err (!%p646_p5)
}
 0x1f7   : > { %s650_s18 = scalar_lea.hbm %s889_s6, 128  ;;  %s654_s24 = scalar_lea.hbm %s934_s3, 256 }
 0x1f8   : > { %p651_p7 = scmp.ne.s32.totalorder %s889_s6, %s650_s18  ;;  %p655_p9 = scmp.lt.s32.totalorder %s889_s6, %s934_s3 }
 0x1f9   : > { %p656_p11 = scmp.lt.s32.totalorder %s654_s24, %s650_s18 }
 0x1fa   : > { %p652_p6 = pnand %p651_p7, %p838_p13 }
 0x1fb   : > { %p657_p12 = por %p656_p11, %p655_p9 }
 0x1fc   : > { %p653_p4 = pneg %p652_p6 }
 0x1fe   : > { %p658_p1 = pnand %p657_p12, %p653_p4 }
 0x200   : > { %661 = shalt.err (!%p658_p1)
}
 0x201   : > { %509 = dma.vmem_to_hbm [thread:$0]  (%p838_p13), %s367_s4, 128, %s889_s6, %s352_s7  }
 0x202 PF: > { %s378_s27 = sand.u32 1, %s700_s12   ;;  %p946_p8 = scmp.ne.s32.totalorder %s939_s23, 0 }
 0x203   : > { %p947_p10 = scmp.ge.s32.totalorder %s720_s17, 2  ;;  %s379_s29 = scalar_lea.sflag [#allocation5], %s378_s27 }
 0x205   : > { %p520_p0 = pnand %p947_p10, %p946_p8 }
 0x207   : > { %p521_p2 = pneg %p520_p0 }
 0x209   : > { %695 = dma.done.wait (%p521_p2), %s379_s29, 128  }
 0x20a   : > { %697 = vsyncadd (%p521_p2), %s379_s29, 4294967168  ;;  %s20_s17 = sadd.s32 1, %s720_s17   ;;  %s948_s12 = smov %s704_s13 }
 0x20b   : > { %p17_p3 = scmp.ge.s32.totalorder %s20_s17, 4   ;;  %s949_s13 = smov %s708_s14 }
 0x20c   : > { %s950_s14 = smov %s847_s19  ;;  %s951_s15 = smov %s716_s16 }
 0x20d   : > { %s952_s16 = smov %s954_s28  ;;  %19 = sbr.rel (!%p17_p3) target bundleno = 7 (0x7), region = 89 }
 0x212   :  { %384 = vsyncpa [#allocation4], 1 }
 0x213   :  { %386 = vsyncpa [#allocation4 + $0x1], 1 }
 0x214   :  { %387 = vsyncpa [#allocation7], 1 }
 0x215   :  { %388 = vsyncpa [#allocation5], 1 }
 0x216   :  { %390 = vsyncpa [#allocation5 + $0x1], 1 }

</bundles_post_ra>
